<compile_context>
chip_gen: v7x
topology: tpu7x:2x2x1
jax: 0.10.0
libtpu: 0.0.40
codegen_flags: <defaults>
</compile_context>

<pallas_src>
import jax
import jax.numpy as jnp
from jax.experimental import pallas as pl
from jax.experimental.pallas import tpu as pltpu


def simple_nn_kernel(x_ref, w1_ref, b1_ref, w2_ref, b2_ref, w3t_ref, b3_ref, o_ref):
    # fc1 + ReLU : (TILE_B, in) @ (in, 128)
    h1 = jnp.dot(x_ref[...], w1_ref[...], preferred_element_type=jnp.float32)
    h1 = jnp.maximum(h1 + b1_ref[...], 0.0)
    # fc2 + ReLU : (TILE_B, 128) @ (128, 128); padded cols 64..127 stay exactly 0
    h2 = jnp.dot(h1, w2_ref[...], preferred_element_type=jnp.float32)
    h2 = jnp.maximum(h2 + b2_ref[...], 0.0)
    # fc3 computed transposed on the MXU so the result is lane-major:
    #   (8, 128) contracted with (TILE_B, 128) on dim 1  ->  (8, TILE_B)
    # Only row 0 is the real output (rows 1..7 of w3t are zero padding).
    z_t = jax.lax.dot_general(
        w3t_ref[...], h2,
        dimension_numbers=(((1,), (1,)), ((), ())),
        preferred_element_type=jnp.float32)
    # Bias + sigmoid on the single real row only (TILE_B/128 vregs of EUP work),
    # stored as a lane-dense (1, TILE_B) row -> 4 B of HBM writeback per sample.
    z_row = z_t[0:1, :] + b3_ref[0, 0]
    o_ref[...] = jax.nn.sigmoid(z_row).astype(o_ref.dtype)


def _ceil_to(a, m):
    return -(-a // m) * m


def simple_nn_forward(x, params, *, tile_b=1024):
    """x: (B, input_size) float32. params: PyTorch-equivalent weights stored
    transposed to (in, out) and biases as (1, out) rows."""
    w1, b1 = params["w1"], params["b1"]
    w2, b2 = params["w2"], params["b2"]
    w3, b3 = params["w3"], params["b3"]

    B, in_dim = x.shape
    H1 = w1.shape[1]            # 128
    HP = 128                    # lane-dense padded width for the fc2 hidden dim

    # --- zero-pad fc2 to a 128-wide lane-dense block (numerically exact) -----
    w2p = jnp.zeros((H1, HP), jnp.float32).at[:, : w2.shape[1]].set(w2)
    b2p = jnp.zeros((1, HP), jnp.float32).at[:, : b2.shape[1]].set(b2)
    # --- fc3 stored transposed: row 0 = w3 column, zero-padded to (8, 128) ---
    w3t = jnp.zeros((8, HP), jnp.float32).at[0, : w3.shape[0]].set(w3[:, 0])
    b3s = jnp.reshape(b3, (1, 1)).astype(jnp.float32)   # scalar bias -> SMEM

    # --- batch tiling ---------------------------------------------------------
    if B <= 256:
        # Tiny batch: single grid step; block shape == full array dims.
        TILE_B = _ceil_to(B, 8)
    else:
        # >= 2 grid steps so both v7x TensorCores get work ("parallel" axis);
        # 128-aligned because batch is the lane dim of the (1, B_pad) output.
        TILE_B = min(tile_b, _ceil_to(pl.cdiv(B, 2), 128))
        # Keep the double-buffered x window under ~24 MiB (v7x: 64 MiB VMEM).
        rows_cap = max(128, ((24 << 20) // (8 * in_dim)) // 128 * 128)
        TILE_B = min(TILE_B, rows_cap)
    B_pad = _ceil_to(B, TILE_B)
    if B_pad != B:
        x = jnp.pad(x, ((0, B_pad - B), (0, 0)))   # padded rows dropped below

    grid = (B_pad // TILE_B,)
    const2 = lambda i: (0, 0)   # weights/biases: same block every step (VMEM-resident)

    # VMEM budget: double-buffered x window + resident weights + headroom.
    x_bytes = 2 * TILE_B * in_dim * 4
    w_bytes = 2 * 4 * (in_dim * HP + HP + HP * HP + HP + 8 * HP)
    vmem_limit = int(min(100 << 20, max(32 << 20, x_bytes + w_bytes + (8 << 20))))

    out = pl.pallas_call(
        simple_nn_kernel,
        out_shape=jax.ShapeDtypeStruct((1, B_pad), jnp.float32),
        grid=grid,
        in_specs=[
            pl.BlockSpec((TILE_B, in_dim), lambda i: (i, 0)),    # stream x over batch
            pl.BlockSpec(w1.shape, const2),
            pl.BlockSpec(b1.shape, const2),
            pl.BlockSpec(w2p.shape, const2),
            pl.BlockSpec(b2p.shape, const2),
            pl.BlockSpec(w3t.shape, const2),
            pl.BlockSpec(memory_space=pltpu.MemorySpace.SMEM),   # b3 scalar
        ],
        out_specs=pl.BlockSpec((1, TILE_B), lambda i: (0, i)),   # lane-dense row store
        compiler_params=pltpu.CompilerParams(
            dimension_semantics=("parallel",),   # shards batch tiles across v7x's 2 TCs
            vmem_limit_bytes=vmem_limit,
        ),
    )(x, w1, b1, w2p, b2p, w3t, b3s)

    # Row 0 of the (1, B_pad) output holds the real values; drop batch padding.
    return out[0, :B].reshape(B, 1)


def init_params(key, input_size):
    """Deterministic synthetic parameters matching nn.Linear shapes.

    PyTorch stores fc.weight as (out, in); here we keep the transposed
    (in, out) layout for direct x @ W matmuls. Biases are (1, out)."""
    ks = jax.random.split(key, 6)

    def lin(kw, kb, fan_in, fan_out):
        bound = 1.0 / jnp.sqrt(jnp.float32(fan_in))
        w = jax.random.uniform(kw, (fan_in, fan_out), jnp.float32, -bound, bound)
        b = jax.random.uniform(kb, (1, fan_out), jnp.float32, -bound, bound)
        return w, b

    w1, b1 = lin(ks[0], ks[1], input_size, 128)
    w2, b2 = lin(ks[2], ks[3], 128, 64)
    w3, b3 = lin(ks[4], ks[5], 64, 1)
    return dict(w1=w1, b1=b1, w2=w2, b2=b2, w3=w3, b3=b3)


if __name__ == "__main__":
    key = jax.random.PRNGKey(0)
    k_x, k_p = jax.random.split(key)

    batch, input_size = 8, 32
    x = jax.random.normal(k_x, (batch, input_size), dtype=jnp.float32)
    params = init_params(k_p, input_size)

    def reference(xv):
        h1 = jnp.maximum(xv @ params["w1"] + params["b1"], 0.0)
        h2 = jnp.maximum(h1 @ params["w2"] + params["b2"], 0.0)
        return jax.nn.sigmoid(h2 @ params["w3"] + params["b3"])

    out = jax.block_until_ready(simple_nn_forward(x, params))
    assert out.shape == (batch, 1), out.shape
    assert jnp.allclose(out, reference(x), atol=1e-5, rtol=1e-5)

    # Multi-tile path: grid > 1 (both v7x TCs), 128-aligned tiles, batch padding.
    x_big = jax.random.normal(k_x, (300, input_size), dtype=jnp.float32)
    out_big = jax.block_until_ready(simple_nn_forward(x_big, params))
    assert out_big.shape == (300, 1), out_big.shape
    assert jnp.allclose(out_big, reference(x_big), atol=1e-5, rtol=1e-5)

    print("KERNEL_OK")
</pallas_src>

<mosaic_0001>
module attributes {stable_mosaic.version = 11 : i64} {
  func.func @simple_nn_kernel(%arg0: i32, %arg1: memref<8x32xf32, #tpu.memory_space<vmem>>, %arg2: memref<32x128xf32, #tpu.memory_space<vmem>>, %arg3: memref<1x128xf32, #tpu.memory_space<vmem>>, %arg4: memref<128x128xf32, #tpu.memory_space<vmem>>, %arg5: memref<1x128xf32, #tpu.memory_space<vmem>>, %arg6: memref<8x128xf32, #tpu.memory_space<vmem>>, %arg7: memref<1x1xf32, #tpu.memory_space<smem>>, %arg8: memref<1x8xf32, #tpu.memory_space<vmem>>) attributes {dimension_semantics = [#tpu.dimension_semantics<parallel>], iteration_bounds = array<i64: 1>, scalar_prefetch = 0 : i64, scratch_operands = 0 : i64, tpu.core_type = #tpu.core_type<tc>, window_params = [{transform_indices = @transform_0, window_bounds = array<i64: 8, 32>}, {pipeline_mode = #tpu.pipeline_mode<synchronous>, transform_indices = @transform_1, window_bounds = array<i64: 32, 128>}, {pipeline_mode = #tpu.pipeline_mode<synchronous>, transform_indices = @transform_2, window_bounds = array<i64: 1, 128>}, {pipeline_mode = #tpu.pipeline_mode<synchronous>, transform_indices = @transform_3, window_bounds = array<i64: 128, 128>}, {pipeline_mode = #tpu.pipeline_mode<synchronous>, transform_indices = @transform_4, window_bounds = array<i64: 1, 128>}, {pipeline_mode = #tpu.pipeline_mode<synchronous>, transform_indices = @transform_5, window_bounds = array<i64: 8, 128>}, {transform_indices = @transform_6, window_bounds = array<i64: 1, 1>}, {transform_indices = @transform_7, window_bounds = array<i64: 1, 8>}]} {
    %c0 = arith.constant 0 : index
    %c0_0 = arith.constant 0 : index
    %0 = vector.load %arg1[%c0, %c0_0] : memref<8x32xf32, #tpu.memory_space<vmem>>, vector<8x32xf32>
    %c0_1 = arith.constant 0 : index
    %c0_2 = arith.constant 0 : index
    %1 = vector.load %arg2[%c0_1, %c0_2] : memref<32x128xf32, #tpu.memory_space<vmem>>, vector<32x128xf32>
    %cst = arith.constant dense<0.000000e+00> : vector<8x128xf32>
    %2 = tpu.matmul %0, %1, %cst {dimension_numbers = #tpu.dot_dimension_numbers<[1], [0], [0], [1], [0, 0, 1, 1], [], []>} : vector<8x32xf32>, vector<32x128xf32>, vector<8x128xf32> -> vector<8x128xf32>
    %c0_3 = arith.constant 0 : index
    %c0_4 = arith.constant 0 : index
    %3 = vector.load %arg3[%c0_3, %c0_4] : memref<1x128xf32, #tpu.memory_space<vmem>>, vector<1x128xf32>
    %4 = vector.broadcast %3 : vector<1x128xf32> to vector<8x128xf32>
    %5 = arith.addf %2, %4 : vector<8x128xf32>
    %cst_5 = arith.constant 0.000000e+00 : f32
    %6 = vector.broadcast %cst_5 : f32 to vector<8x128xf32>
    %7 = arith.maximumf %5, %6 : vector<8x128xf32>
    %c0_6 = arith.constant 0 : index
    %c0_7 = arith.constant 0 : index
    %8 = vector.load %arg4[%c0_6, %c0_7] : memref<128x128xf32, #tpu.memory_space<vmem>>, vector<128x128xf32>
    %cst_8 = arith.constant dense<0.000000e+00> : vector<8x128xf32>
    %9 = tpu.matmul %7, %8, %cst_8 {dimension_numbers = #tpu.dot_dimension_numbers<[1], [0], [0], [1], [0, 0, 1, 1], [], []>} : vector<8x128xf32>, vector<128x128xf32>, vector<8x128xf32> -> vector<8x128xf32>
    %c0_9 = arith.constant 0 : index
    %c0_10 = arith.constant 0 : index
    %10 = vector.load %arg5[%c0_9, %c0_10] : memref<1x128xf32, #tpu.memory_space<vmem>>, vector<1x128xf32>
    %11 = vector.broadcast %10 : vector<1x128xf32> to vector<8x128xf32>
    %12 = arith.addf %9, %11 : vector<8x128xf32>
    %cst_11 = arith.constant 0.000000e+00 : f32
    %13 = vector.broadcast %cst_11 : f32 to vector<8x128xf32>
    %14 = arith.maximumf %12, %13 : vector<8x128xf32>
    %c0_12 = arith.constant 0 : index
    %c0_13 = arith.constant 0 : index
    %15 = vector.load %arg6[%c0_12, %c0_13] : memref<8x128xf32, #tpu.memory_space<vmem>>, vector<8x128xf32>
    %cst_14 = arith.constant dense<0.000000e+00> : vector<8x8xf32>
    %16 = tpu.matmul %15, %14, %cst_14 {dimension_numbers = #tpu.dot_dimension_numbers<[1], [1], [0], [0], [0, 0, 1, 0], [], []>} : vector<8x128xf32>, vector<8x128xf32>, vector<8x8xf32> -> vector<8x8xf32>
    %17 = vector.extract_strided_slice %16 {offsets = [0, 0], sizes = [1, 8], strides = [1, 1]} : vector<8x8xf32> to vector<1x8xf32>
    %c0_15 = arith.constant 0 : index
    %c0_16 = arith.constant 0 : index
    %18 = memref.load %arg7[%c0_15, %c0_16] : memref<1x1xf32, #tpu.memory_space<smem>>
    %19 = vector.broadcast %18 : f32 to vector<1x8xf32>
    %20 = arith.addf %17, %19 : vector<1x8xf32>
    %21 = arith.negf %20 : vector<1x8xf32>
    %22 = math.exp %21 : vector<1x8xf32>
    %cst_17 = arith.constant 1.000000e+00 : f32
    %23 = vector.broadcast %cst_17 : f32 to vector<1x8xf32>
    %24 = arith.addf %23, %22 : vector<1x8xf32>
    %25 = arith.divf %23, %24 : vector<1x8xf32>
    %c0_18 = arith.constant 0 : index
    %c0_19 = arith.constant 0 : index
    %26 = vector.load %arg8[%c0_18, %c0_19] : memref<1x8xf32, #tpu.memory_space<vmem>>, vector<1x8xf32>
    tpu.vector_store %arg8[%c0_18, %c0_19], %25 {strides = array<i32>} : memref<1x8xf32, #tpu.memory_space<vmem>>, vector<1x8xf32>,
    return
  }
  func.func @transform_0(%arg0: i32) -> (i32, i32) {
    %c0_i32 = arith.constant 0 : i32
    %c0_i32_0 = arith.constant 0 : i32
    return %arg0, %c0_i32 : i32, i32
  }
  func.func @transform_1(%arg0: i32) -> (i32, i32) {
    %c0_i32 = arith.constant 0 : i32
    %c0_i32_0 = arith.constant 0 : i32
    %c0_i32_1 = arith.constant 0 : i32
    return %c0_i32, %c0_i32_0 : i32, i32
  }
  func.func @transform_2(%arg0: i32) -> (i32, i32) {
    %c0_i32 = arith.constant 0 : i32
    %c0_i32_0 = arith.constant 0 : i32
    %c0_i32_1 = arith.constant 0 : i32
    return %c0_i32, %c0_i32_0 : i32, i32
  }
  func.func @transform_3(%arg0: i32) -> (i32, i32) {
    %c0_i32 = arith.constant 0 : i32
    %c0_i32_0 = arith.constant 0 : i32
    %c0_i32_1 = arith.constant 0 : i32
    return %c0_i32, %c0_i32_0 : i32, i32
  }
  func.func @transform_4(%arg0: i32) -> (i32, i32) {
    %c0_i32 = arith.constant 0 : i32
    %c0_i32_0 = arith.constant 0 : i32
    %c0_i32_1 = arith.constant 0 : i32
    return %c0_i32, %c0_i32_0 : i32, i32
  }
  func.func @transform_5(%arg0: i32) -> (i32, i32) {
    %c0_i32 = arith.constant 0 : i32
    %c0_i32_0 = arith.constant 0 : i32
    %c0_i32_1 = arith.constant 0 : i32
    return %c0_i32, %c0_i32_0 : i32, i32
  }
  func.func @transform_6(%arg0: i32) -> (i32, i32) {
    %c0_i32 = arith.constant 0 : i32
    %c0_i32_0 = arith.constant 0 : i32
    %c0_i32_1 = arith.constant 0 : i32
    return %c0_i32, %c0_i32_0 : i32, i32
  }
  func.func @transform_7(%arg0: i32) -> (i32, i32) {
    %c0_i32 = arith.constant 0 : i32
    %c0_i32_0 = arith.constant 0 : i32
    return %c0_i32, %arg0 : i32, i32
  }
}

</mosaic_0001>

<bundles_post_ra>
// kernel: tpu_custom_call.1
= control target key start
LH: loop header
LB: loop body
LE: loop exit
PB: predicated region body
PF: predicated region fallthrough
CT: control target
= control target key end

     0   :  { %13 = vsyncpa [#allocation4], 0  ;;  %s680_s0 = inlined_call_operand.hbm [shape: f32[8,32], index: 0, kind: input, shape index: {}]   ;;  %s681_s1 = inlined_call_operand.hbm [shape: f32[32,128], index: 1, kind: input, shape index: {}]   ;;  %s682_s2 = inlined_call_operand.vmem [shape: f32[1,128], index: 2, kind: input, shape index: {}]   ;;  %s683_s3 = inlined_call_operand.hbm [shape: f32[128,128], index: 3, kind: input, shape index: {}]   ;;  %s684_s4 = inlined_call_operand.vmem [shape: f32[1,128], index: 4, kind: input, shape index: {}]   ;;  %s685_s5 = inlined_call_operand.vmem [shape: f32[8,128], index: 5, kind: input, shape index: {}]   ;;  %s686_s6 = inlined_call_operand.<no memory space> [shape: f32[1,1], index: 6, kind: input, shape index: {}]   ;;  %s687_s7 = inlined_call_operand.hbm [shape: f32[1,8], index: 7, kind: output, shape index: {}]  }
   0x1   :  { %14 = vsyncpa [#allocation7], 0 }
   0x2   :  { %15 = vsyncpa [#allocation5], 0  ;;  %s562_s24 = smov [#allocation6]   ;;  %s468_s28 = scalar_lea.hbm %s681_s1, 512 }
   0x3   :  { %s31_s25 = sshll.u32 %s562_s24, 4  ;;  %p469_p0 = scmp.ne.s32.totalorder %s681_s1, %s468_s28  ;;  %s32_s25 = int_to_ptr.vmem [resolvable:$true] %s31_s25 }
   0x4   :  { %p472_p1 = scmp.lt.u32.totalorder %s468_s28, %s681_s1 }
   0x6   :  { %p474_p2 = pnand %p472_p1, %p469_p0 }
   0x8   :  { %477 = shalt.err (!%p474_p2)
}
   0x9   :  { %s478_s10 = scalar_lea.vmem %s32_s25, 512  ;;  %p483_p4 = scmp.lt.s32.totalorder %s32_s25, %s32_s25 }
   0xa   :  { %p479_p3 = scmp.ne.s32.totalorder %s32_s25, %s478_s10  ;;  %p484_p5 = scmp.lt.s32.totalorder %s478_s10, %s478_s10 }
   0xc   :  { %p485_p6 = por %p484_p5, %p483_p4 }
   0xe   :  { %p486_p7 = pnand %p485_p6, %p479_p3 }
  0x10   :  { %489 = shalt.err (!%p486_p7)
}
  0x11   :  { %s563_s11 = smov 128   ;;  %s564_s12 = smov 8  }
  0x12   :  { %37 = dma.hbm_to_vmem [thread:$0]  %s681_s1, 512, %s32_s25, [#allocation7], %s563_s11, %s563_s11, %s564_s12  }
  0x13   :  { %s565_s15 = smov [#allocation3]   ;;  %s566_s17 = smov [#allocation8]  }
  0x14   :  { %s22_s16 = sshll.u32 %s565_s15, 4  ;;  %s45_s18 = sshll.u32 %s566_s17, 4  ;;  %s23_s16 = int_to_ptr.vmem [resolvable:$true] %s22_s16  ;;  %s46_s18 = int_to_ptr.vmem [resolvable:$true] %s45_s18 }
  0x15   :  { %s490_s21 = scalar_lea.hbm %s680_s0, 128 }
  0x16   :  { %p491_p8 = scmp.ne.s32.totalorder %s680_s0, %s490_s21  ;;  %p494_p9 = scmp.lt.u32.totalorder %s490_s21, %s680_s0 }
  0x18   :  { %p496_p10 = pnand %p494_p9, %p491_p8 }
  0x1a   :  { %499 = shalt.err (!%p496_p10)
}
  0x1b   :  { %s500_s1 = scalar_lea.vmem %s23_s16, 128  ;;  %p505_p12 = scmp.lt.s32.totalorder %s23_s16, %s23_s16 }
  0x1c   :  { %p501_p11 = scmp.ne.s32.totalorder %s23_s16, %s500_s1  ;;  %p506_p13 = scmp.lt.s32.totalorder %s500_s1, %s500_s1 }
  0x1e   :  { %p507_p0 = por %p506_p13, %p505_p12 }
  0x20   :  { %p508_p1 = pnand %p507_p0, %p501_p11 }
  0x22   :  { %511 = shalt.err (!%p508_p1)
}
  0x23   :  { %25 = dma.hbm_to_vmem [thread:$0]  %s680_s0, 128, %s23_s16, [#allocation4]  }
  0x24   :  { %s512_s30 = scalar_lea.hbm %s683_s3, 2048 }
  0x25   :  { %p513_p2 = scmp.ne.s32.totalorder %s683_s3, %s512_s30  ;;  %p516_p3 = scmp.lt.u32.totalorder %s512_s30, %s683_s3 }
  0x27   :  { %p518_p4 = pnand %p516_p3, %p513_p2 }
  0x29   :  { %521 = shalt.err (!%p518_p4)
}
  0x2a   :  { %s522_s14 = scalar_lea.vmem %s46_s18, 2048  ;;  %p527_p6 = scmp.lt.s32.totalorder %s46_s18, %s46_s18 }
  0x2b   :  { %p523_p5 = scmp.ne.s32.totalorder %s46_s18, %s522_s14  ;;  %p528_p7 = scmp.lt.s32.totalorder %s522_s14, %s522_s14 }
  0x2d   :  { %p529_p8 = por %p528_p7, %p527_p6 }
  0x2f   :  { %p530_p9 = pnand %p529_p8, %p523_p5 }
  0x31   :  { %533 = shalt.err (!%p530_p9)
}
  0x32   :  { %51 = dma.hbm_to_vmem [thread:$0]  %s683_s3, 2048, %s46_s18, [#allocation7], %s563_s11, %s563_s11, %s564_s12  }
  0x33   :  { %556 = dma.done.wait [#allocation4], 128  }
  0x34   :  { %557 = vsyncadd [#allocation4], 4294967168 }
  0x35   :  { %558 = dma.done.wait [#allocation7], 2560  }
  0x36   :  { %559 = vsyncadd [#allocation7], 4294964736  ;;  %v567_v0 = vmov 0.0|0.0   ;;  %vm568_vm0 = vmmov 0   ;;  %v569_v1 = vmov 0.0   ;;  %v68_v2 = vld [vmem:[#allocation6] sm:$0xff]  ;;  %v320_v44 = vstv %s686_s6 }
  0x37   :  { %425 = vmatprep.subr.bf16.mxu0 %v567_v0  ;;  %382 = vmatprep.mubr.msk.f32.mxu0 %vm568_vm0, %v569_v1  ;;  %v69_v3 = vld [vmem:[#allocation6 + $0x8] sm:$0xff]  ;;  %v70_v4 = vld [vmem:[#allocation6 + $0x10] sm:$0xff]  ;;  %v71_v6 = vld [vmem:[#allocation6 + $0x18] sm:$0xff]  ;;  %vm79_vm1 = vcmask 261120   ;;  %vm328_vm2 = vcmask 57344  }
  0x38   :  { %431 = vmatprep.subr.bf16.mxu1 %v567_v0  ;;  %417 = vmatprep.mubr.msk.f32.mxu1 %vm568_vm0, %v569_v1  ;;  %v426_v5 = vpack.c.bf16 %v69_v3, %v68_v2  ;;  %v154_v7 = vld [vmem:[#allocation8] sm:$0xff]  ;;  %v155_v8 = vld [vmem:[#allocation8 + $0x8] sm:$0xff]  ;;  %v156_v9 = vld [vmem:[#allocation8 + $0x10] sm:$0xff]  ;;  %v429_v11 = vpack.c.bf16 %v71_v6, %v70_v4 }
  0x39   :  { %v157_v10 = vld [vmem:[#allocation8 + $0x18] sm:$0xff]  ;;  %v432_v12 = vpack.c.bf16 %v155_v8, %v154_v7  ;;  %v158_v14 = vld [vmem:[#allocation8 + $0x20] sm:$0xff]  ;;  %v159_v15 = vld [vmem:[#allocation8 + $0x28] sm:$0xff] }
  0x3a   :  { %427 = vmatpush3.bf16.msra.mxu0 %v426_v5  ;;  %v435_v13 = vpack.c.bf16 %v157_v10, %v156_v9  ;;  %v67_v16 = vld [vmem:[#allocation3] sm:$0xff]  ;;  %v438_v17 = vpack.c.bf16 %v159_v15, %v158_v14  ;;  %v160_v18 = vld [vmem:[#allocation8 + $0x30] sm:$0xff]  ;;  %v162_v21 = vld [vmem:[#allocation8 + $0x40] sm:$0xff] }
  0x3b   :  { %428 = vmatprep.subr.bf16.mxu0 %v567_v0  ;;  %433 = vmatpush3.bf16.msra.mxu1 %v432_v12  ;;  %v161_v19 = vld [vmem:[#allocation8 + $0x38] sm:$0xff]  ;;  %v163_v22 = vld [vmem:[#allocation8 + $0x48] sm:$0xff]  ;;  %v164_v24 = vld [vmem:[#allocation8 + $0x50] sm:$0xff] }
  0x3c   :  { %434 = vmatprep.subr.bf16.mxu1 %v567_v0  ;;  %v441_v20 = vpack.c.bf16 %v161_v19, %v160_v18  ;;  %v444_v23 = vpack.c.bf16 %v163_v22, %v162_v21  ;;  %v165_v25 = vld [vmem:[#allocation8 + $0x58] sm:$0xff]  ;;  %v166_v27 = vld [vmem:[#allocation8 + $0x60] sm:$0xff]  ;;  %v167_v28 = vld [vmem:[#allocation8 + $0x68] sm:$0xff] }
  0x3d   :  { %v447_v26 = vpack.c.bf16 %v165_v25, %v164_v24  ;;  %v450_v29 = vpack.c.bf16 %v167_v28, %v166_v27  ;;  %v168_v30 = vld [vmem:[#allocation8 + $0x70] sm:$0xff]  ;;  %v169_v31 = vld [vmem:[#allocation8 + $0x78] sm:$0xff] }
  0x3e   :  { %430 = vmatpush3.bf16.msra.mxu0 %v429_v11  ;;  %v453_v32 = vpack.c.bf16 %v169_v31, %v168_v30  ;;  %v346_v33 = vld [vmem:[%s682_s2] ss:$0 sm:$0xff] }
  0x3f   :  { %420 = vmatprep.subr.mxu0 %v569_v1  ;;  %436 = vmatpush3.bf16.msra.mxu1 %v435_v13  ;;  %v348_v38 = vld [vmem:[%s684_s4] ss:$0 sm:$0xff]  ;;  %s570_s4 = smov [#allocation9]  }
  0x40   :  { %437 = vmatprep.subr.bf16.mxu1 %v567_v0  ;;  %v248_v43 = vld [vmem:[%s685_s5] sm:$0xff]  ;;  %s336_s20 = sshll.u32 %s570_s4, 4  ;;  %s337_s20 = int_to_ptr.vmem [resolvable:$true] %s336_s20 }
  0x41   :  { %383 = vmatmul.mubr.msk.f32.vlgmr.msra.gmra.mrb[0].mxu0 %vm79_vm1, %v67_v16  ;;  %s534_s5 = scalar_lea.vmem %s337_s20, 16  ;;  %s538_s21 = scalar_lea.vmem %s337_s20, 32 }
  0x42   :  { %422 = vmatprep.mubr.msk.f32.mxu0 %vm568_vm0, %v569_v1  ;;  %p535_p10 = scmp.ne.s32.totalorder %s337_s20, %s534_s5  ;;  %p539_p11 = scmp.lt.s32.totalorder %s337_s20, %s337_s20 }
  0x43   :  { %439 = vmatpush3.bf16.msra.mxu1 %v438_v17  ;;  %p540_p12 = scmp.lt.s32.totalorder %s538_s21, %s534_s5 }
  0x44   :  { %440 = vmatprep.subr.bf16.mxu1 %v567_v0 }
  0x45   :  { %p541_p13 = por %p540_p12, %p539_p11 }
  0x47   :  { %442 = vmatpush3.bf16.msra.mxu1 %v441_v20  ;;  %p542_p0 = pnand %p541_p13, %p535_p10 }
  0x48   :  { %443 = vmatprep.subr.bf16.mxu1 %v567_v0 }
  0x4b   :  { %445 = vmatpush3.bf16.msra.mxu1 %v444_v23 }
  0x4c   :  { %446 = vmatprep.subr.bf16.mxu1 %v567_v0 }
  0x4f   :  { %448 = vmatpush3.bf16.msra.mxu1 %v447_v26 }
  0x50   :  { %449 = vmatprep.subr.bf16.mxu1 %v567_v0 }
  0x53   :  { %451 = vmatpush3.bf16.msra.mxu1 %v450_v29 }
  0x54   :  { %452 = vmatprep.subr.bf16.mxu1 %v567_v0 }
  0x57   :  { %454 = vmatpush3.bf16.msra.mxu1 %v453_v32 }
 0x114   :  { %v149_v34 = vpop.f32.mrb[0].mxu0 }
 0x115   :  { %v150_v35 = vadd.f32 %v346_v33, %v149_v34  ;;  %v384_v36 = vpop.f32.mrb[1].mxu0 }
 0x117   :  { %v153_v37 = vmax.f32 %v150_v35, 0.0 }
 0x119   :  { %418 = vmatmul.mubr.f32.vlgmr.msra.gmra.mrb[0].mxu1 %v153_v37 }
 0x1ec   :  { %v243_v39 = vpop.f32.mrb[0].mxu1 }
 0x1ed   :  { %v244_v40 = vadd.f32 %v348_v38, %v243_v39  ;;  %v419_v41 = vpop.f32.mrb[1].mxu1 }
 0x1ef   :  { %v247_v42 = vmax.f32 %v244_v40, 0.0 }
 0x1f1   :  { %421 = vmatpush3.xpose.msra.mxu0 %v247_v42 }
 0x1f4   :  { %423 = vmatmul.mubr.f32.vlgmr.msra.gmra.mrb[2].mxu0 %v248_v43 }
 0x2c7   :  { %v315_v45 = vpop.f32.mrb[2].mxu0 }
 0x2c8   :  { %v321_v46 = vadd.f32 %v320_v44, %v315_v45  ;;  %v424_v47 = vpop.f32.mrb[3].mxu0 }
 0x2ca   :  { %v349_v48 = vmul.f32 -1.442695, %v321_v46 }
 0x2cc   :  { %464 = vpow2.f32 %v349_v48 }
 0x2d6   :  { %v465_v49 = vpop.eup %464 }
 0x2d7   :  { %v325_v50 = vadd.f32 1.0, %v465_v49 }
 0x2d9   :  { %466 = vrcp.f32 %v325_v50 }
 0x2e3   :  { %v467_v51 = vpop.eup %466 }
 0x2e4   :  { %329 = vst.msk [vmem:[#allocation9] sm:$0x1] %vm328_vm2, %v467_v51 }
 0x2e5   :  { %545 = shalt.err (!%p542_p0)
}
 0x2e6   :  { %s546_s23 = scalar_lea.hbm %s687_s7, 16 }
 0x2e7   :  { %p547_p1 = scmp.ne.s32.totalorder %s687_s7, %s546_s23  ;;  %p550_p2 = scmp.lt.u32.totalorder %s546_s23, %s687_s7 }
 0x2e9   :  { %p552_p3 = pnand %p550_p2, %p547_p1 }
 0x2eb   :  { %555 = shalt.err (!%p552_p3)
}
 0x2ec   :  { %339 = dma.vmem_to_hbm [thread:$0]  %s337_s20, 16, %s687_s7, [#allocation5]  }
 0x2ed   :  { %560 = dma.done.wait [#allocation5], 16  }
 0x2ee   :  { %561 = vsyncadd [#allocation5], 4294967280 }
 0x2ef   :  { %343 = vsyncpa [#allocation4], 1 }
 0x2f0   :  { %344 = vsyncpa [#allocation7], 1 }
 0x2f1   :  { %345 = vsyncpa [#allocation5], 1 }

</bundles_post_ra>
